<compile_context>
chip_gen: v7x
topology: tpu7x:2x2x1
jax: 0.10.0
libtpu: 0.0.40
codegen_flags: <defaults>
</compile_context>

<pallas_src>
import math
import functools

import jax
import jax.numpy as jnp
from jax.experimental import pallas as pl
from jax.experimental.pallas import tpu as pltpu


def _round_up(v, m):
    return ((v + m - 1) // m) * m


def _choose_tile(size, align, cap):
    """Return (tile, padded_size).

    tile is `align`-aligned, <= cap, and divides padded_size.  Padding is kept
    minimal: layout padding only when the whole extent fits in one tile,
    otherwise prefer an exact aligned divisor of the minimally padded extent,
    falling back to < cap worth of padding (negligible for large extents).
    """
    padded = _round_up(size, align)
    if padded <= cap:
        return padded, padded
    best = align
    t = (cap // align) * align
    while t >= align:
        if padded % t == 0:
            best = t
            break
        t -= align
    if best >= max(align, cap // 2):
        return best, padded
    tile = (cap // align) * align
    return tile, _round_up(size, tile)


def _vmem_limit_bytes():
    try:
        kind = jax.devices()[0].device_kind.lower()
    except Exception:
        kind = ""
    if "v7" in kind:
        return 48 * 1024 * 1024          # v7x: 64 MiB physical VMEM per TC
    if "v5" in kind or "v6" in kind:
        return 96 * 1024 * 1024          # v5e / v6e: 128 MiB physical VMEM
    return None                          # unknown chip -> compiler default


# ----------------------------------------------------------------------------
# Margin epilogue (f32 math, cast only at the final store).
# ----------------------------------------------------------------------------
def _margin_epilogue(acc, side_ref, rcol_ref, cos_ref, cosm_ref, easy_margin):
    side = side_ref[...]                 # (TM, 8) packed per-row scalars (f32)
    recip_row = side[:, 0:1]             # 1/||x_row|| (0 for exact-zero rows)
    cos_m = side[:, 1:2]
    sin_m = side[:, 2:3]
    recip_col = rcol_ref[...]            # (1, TN) 1/||w_col|| (0 for pad cols)

    cos_theta = acc * recip_row * recip_col
    cos_theta = jnp.clip(cos_theta, -1.0, 1.0)
    sin_theta = jnp.sqrt(jnp.maximum(1.0 - cos_theta * cos_theta, 0.0))
    cos_theta_m = cos_theta * cos_m - sin_theta * sin_m
    if easy_margin:
        cos_theta_m = jnp.where(cos_theta > 0.0, cos_theta_m, cos_theta)
    else:
        thr = side[:, 3:4]
        mm = side[:, 4:5]
        cos_theta_m = jnp.where(cos_theta > thr, cos_theta_m, cos_theta - mm)

    cos_ref[...] = cos_theta.astype(cos_ref.dtype)
    cosm_ref[...] = cos_theta_m.astype(cosm_ref.dtype)


# ----------------------------------------------------------------------------
# Main kernels: bf16 MXU matmul + f32 margin epilogue.
# ----------------------------------------------------------------------------
def _maglinear_kernel_single_k(x_ref, w_ref, side_ref, rcol_ref,
                               cos_ref, cosm_ref, *, easy_margin):
    # D fits in one K tile: no VMEM accumulator, dot feeds the epilogue directly.
    acc = jnp.dot(x_ref[...], w_ref[...], preferred_element_type=jnp.float32)
    _margin_epilogue(acc, side_ref, rcol_ref, cos_ref, cosm_ref, easy_margin)


def _maglinear_kernel_multi_k(x_ref, w_ref, side_ref, rcol_ref,
                              cos_ref, cosm_ref, acc_ref, *, easy_margin):
    k = pl.program_id(2)
    prod = jnp.dot(x_ref[...], w_ref[...], preferred_element_type=jnp.float32)

    @pl.when(k == 0)
    def _():
        acc_ref[...] = prod              # k==0 specialization: no zero-init

    @pl.when(k != 0)
    def _():
        acc_ref[...] += prod

    @pl.when(k == pl.num_programs(2) - 1)
    def _():
        _margin_epilogue(acc_ref[...], side_ref, rcol_ref,
                         cos_ref, cosm_ref, easy_margin)


# ----------------------------------------------------------------------------
# Module wrapper
# ----------------------------------------------------------------------------
class MagLinear:
    """JAX/Pallas port of MagFace's MagLinear (parallel FC for Mag loss)."""

    def __init__(self, in_features, out_features, s=64.0, easy_margin=True,
                 key=None, out_dtype=jnp.bfloat16):
        if key is None:
            key = jax.random.PRNGKey(42)
        self.in_features = in_features
        self.out_features = out_features
        self.s = s
        self.easy_margin = easy_margin
        self.out_dtype = out_dtype

        # Tile configuration (fixed at init; TM depends on batch, picked per call).
        # TN/TK: lane-aligned, caps sized for v7x's 64 MiB VMEM (also fine on
        # v5e/v6e); TM cap 512 per call.
        self._TK, self._Dp = _choose_tile(in_features, 128, 512)
        self._TN, self._Np = _choose_tile(out_features, 128, 1024)

        # weight.data.uniform_(-1, 1).renorm_(2, 1, 1e-05).mul_(100000.0)
        w = jax.random.uniform(key, (in_features, out_features),
                               minval=-1.0, maxval=1.0, dtype=jnp.float32)
        col_norm = jnp.sqrt(jnp.sum(w * w, axis=0, keepdims=True))
        scale = jnp.where(col_norm > 1e-5, 1e-5 / (col_norm + 1e-7), 1.0)
        self.weight = w * scale * 1e5                          # (D, N) f32

        # Cached once: padded bf16 weight (MXU operand) + reciprocal column
        # norms.  Rebuilding these per forward was the biggest HBM waste.
        D, N = in_features, out_features
        w_pad = jnp.zeros((self._Dp, self._Np), jnp.float32)
        w_pad = w_pad.at[:D, :N].set(self.weight)
        self._w_bf16 = w_pad.astype(jnp.bfloat16)              # (Dp, Np)
        cn = jnp.sqrt(jnp.sum(w_pad * w_pad, axis=0, keepdims=True))
        self._recip_col = jnp.where(cn > 1e-12, 1.0 / cn, 0.0)  # (1, Np) f32

    def __call__(self, x, m, l_a, u_a):
        B, D = x.shape
        assert D == self.in_features
        N = self.out_features
        Dp, Np, TK, TN = self._Dp, self._Np, self._TK, self._TN
        TM, Bp = _choose_tile(B, 16, 512)   # 16 = bf16 sublane packing

        # --- plain-XLA glue: x is tiny, norms + user margin fn stay in f32 ---
        x_f32 = x.astype(jnp.float32)
        raw_norm = jnp.sqrt(jnp.sum(x_f32 * x_f32, axis=1, keepdims=True))  # (B,1)
        x_norm = jnp.clip(raw_norm, l_a, u_a)
        ada_margin = m(x_norm)              # TODO(synk): user fn stays in XLA glue
        cos_m = jnp.cos(ada_margin)
        sin_m = jnp.sin(ada_margin)
        if self.easy_margin:
            thr = jnp.zeros_like(cos_m)
            mm = jnp.zeros_like(cos_m)
        else:
            mm = jnp.sin(math.pi - ada_margin) * ada_margin
            thr = jnp.cos(math.pi - ada_margin)
        recip_row = jnp.where(raw_norm > 1e-12, 1.0 / raw_norm, 0.0)

        # Pack per-row scalars into one (Bp, 8) f32 block (single small DMA).
        side = jnp.zeros((Bp, 8), jnp.float32)
        side = side.at[:B, 0:1].set(recip_row)
        side = side.at[:B, 1:2].set(cos_m)
        side = side.at[:B, 2:3].set(sin_m)
        side = side.at[:B, 3:4].set(thr)
        side = side.at[:B, 4:5].set(mm)

        # x padded directly in bf16 (no f32 padded copy).
        x_bf16 = jnp.zeros((Bp, Dp), jnp.bfloat16)
        x_bf16 = x_bf16.at[:B, :D].set(x_f32.astype(jnp.bfloat16))

        # --- main Pallas kernel ---
        num_k = Dp // TK
        out_itemsize = jnp.dtype(self.out_dtype).itemsize
        cost = pl.CostEstimate(
            flops=2 * Bp * Dp * Np,
            transcendentals=Bp * Np,
            bytes_accessed=(Bp * Dp * 2 * (Np // TN)
                            + Dp * Np * 2 * (Bp // TM)
                            + 2 * Bp * Np * out_itemsize
                            + Bp * 8 * 4 + Np * 4),
        )
        out_shape = (jax.ShapeDtypeStruct((Bp, Np), self.out_dtype),
                     jax.ShapeDtypeStruct((Bp, Np), self.out_dtype))

        if num_k == 1:
            kernel = functools.partial(_maglinear_kernel_single_k,
                                       easy_margin=self.easy_margin)
            grid = (Bp // TM, Np // TN)
            in_specs = [
                pl.BlockSpec((TM, TK), lambda i, j: (i, 0)),   # x (bf16)
                pl.BlockSpec((TK, TN), lambda i, j: (0, j)),   # w (bf16)
                pl.BlockSpec((TM, 8), lambda i, j: (i, 0)),    # packed row scalars
                pl.BlockSpec((1, TN), lambda i, j: (0, j)),    # recip col norms
            ]
            out_specs = (pl.BlockSpec((TM, TN), lambda i, j: (i, j)),
                         pl.BlockSpec((TM, TN), lambda i, j: (i, j)))
            scratch = []
            dims = ("parallel", "parallel")
        else:
            kernel = functools.partial(_maglinear_kernel_multi_k,
                                       easy_margin=self.easy_margin)
            grid = (Bp // TM, Np // TN, num_k)
            in_specs = [
                pl.BlockSpec((TM, TK), lambda i, j, k: (i, k)),
                pl.BlockSpec((TK, TN), lambda i, j, k: (k, j)),
                pl.BlockSpec((TM, 8), lambda i, j, k: (i, 0)),
                pl.BlockSpec((1, TN), lambda i, j, k: (0, j)),
            ]
            out_specs = (pl.BlockSpec((TM, TN), lambda i, j, k: (i, j)),
                         pl.BlockSpec((TM, TN), lambda i, j, k: (i, j)))
            scratch = [pltpu.VMEM((TM, TN), jnp.float32)]
            dims = ("parallel", "parallel", "arbitrary")

        cos_pad, cosm_pad = pl.pallas_call(
            kernel,
            out_shape=out_shape,
            grid_spec=pltpu.PrefetchScalarGridSpec(
                num_scalar_prefetch=0,
                grid=grid,
                in_specs=in_specs,
                out_specs=out_specs,
                scratch_shapes=scratch,
            ),
            compiler_params=pltpu.CompilerParams(
                dimension_semantics=dims,
                vmem_limit_bytes=_vmem_limit_bytes()),
            cost_estimate=cost,
        )(x_bf16, self._w_bf16, side, self._recip_col)

        cos_theta = cos_pad[:B, :N]
        cos_theta_m = cosm_pad[:B, :N]
        return [cos_theta, cos_theta_m], x_norm


if __name__ == "__main__":
    # Small deterministic example consistent with the module's forward:
    # x: (batch=8, in_features=32), weight: (32, out_features=16)
    B, IN, OUT = 8, 32, 16
    l_a, u_a = 10.0, 110.0
    l_m, u_m = 0.45, 0.8

    key = jax.random.PRNGKey(0)
    kx, kw = jax.random.split(key)
    # Scale x so its norms land inside [l_a, u_a] for a meaningful margin.
    x = jax.random.normal(kx, (B, IN), dtype=jnp.float32) * 5.0

    def margin_fn(a):
        # Standard MagFace linear adaptive margin m(a).
        return (u_m - l_m) / (u_a - l_a) * (a - l_a) + l_m

    layer = MagLinear(IN, OUT, s=64.0, easy_margin=True, key=kw)
    (cos_theta, cos_theta_m), x_norm = layer(x, margin_fn, l_a, u_a)
    jax.block_until_ready((cos_theta, cos_theta_m, x_norm))

    assert cos_theta.shape == (B, OUT)
    assert cos_theta_m.shape == (B, OUT)
    assert x_norm.shape == (B, 1)
    assert bool(jnp.all(jnp.isfinite(cos_theta)))
    assert bool(jnp.all(jnp.isfinite(cos_theta_m)))
    assert bool(jnp.all(cos_theta <= 1.0)) and bool(jnp.all(cos_theta >= -1.0))

    # Plain-JAX f32 reference (mirrors the PyTorch forward) for a sanity check.
    w = layer.weight
    xn = jnp.sqrt(jnp.sum(x * x, axis=1, keepdims=True))
    x_n = x / jnp.maximum(xn, 1e-12)
    w_n = w / jnp.maximum(jnp.sqrt(jnp.sum(w * w, axis=0, keepdims=True)), 1e-12)
    cos_ref = jnp.clip(x_n @ w_n, -1.0, 1.0)
    ada = margin_fn(jnp.clip(xn, l_a, u_a))
    sin_ref = jnp.sqrt(jnp.maximum(1.0 - cos_ref * cos_ref, 0.0))
    cosm_ref = cos_ref * jnp.cos(ada) - sin_ref * jnp.sin(ada)
    cosm_ref = jnp.where(cos_ref > 0.0, cosm_ref, cos_ref)

    assert float(jnp.max(jnp.abs(cos_theta.astype(jnp.float32) - cos_ref))) < 5e-2
    assert float(jnp.max(jnp.abs(cos_theta_m.astype(jnp.float32) - cosm_ref))) < 5e-2
    assert float(jnp.max(jnp.abs(x_norm - jnp.clip(xn, l_a, u_a)))) < 1e-4

    print("KERNEL_OK")
</pallas_src>

<mosaic_0001>
module attributes {stable_mosaic.version = 11 : i64} {
  func.func @_maglinear_kernel_single_k(%arg0: i32, %arg1: i32, %arg2: memref<16x128xbf16, #tpu.memory_space<vmem>>, %arg3: memref<128x128xbf16, #tpu.memory_space<vmem>>, %arg4: memref<16x8xf32, #tpu.memory_space<vmem>>, %arg5: memref<1x128xf32, #tpu.memory_space<vmem>>, %arg6: memref<16x128xbf16, #tpu.memory_space<vmem>>, %arg7: memref<16x128xbf16, #tpu.memory_space<vmem>>) attributes {dimension_semantics = [#tpu.dimension_semantics<parallel>, #tpu.dimension_semantics<parallel>], iteration_bounds = array<i64: 1, 1>, scalar_prefetch = 0 : i64, scratch_operands = 0 : i64, tpu.core_type = #tpu.core_type<tc>, window_params = [{transform_indices = @transform_0, window_bounds = array<i64: 16, 128>}, {transform_indices = @transform_1, window_bounds = array<i64: 128, 128>}, {transform_indices = @transform_2, window_bounds = array<i64: 16, 8>}, {transform_indices = @transform_3, window_bounds = array<i64: 1, 128>}, {transform_indices = @transform_4, window_bounds = array<i64: 16, 128>}, {transform_indices = @transform_5, window_bounds = array<i64: 16, 128>}]} {
    %c0 = arith.constant 0 : index
    %c0_0 = arith.constant 0 : index
    %0 = vector.load %arg2[%c0, %c0_0] : memref<16x128xbf16, #tpu.memory_space<vmem>>, vector<16x128xbf16>
    %c0_1 = arith.constant 0 : index
    %c0_2 = arith.constant 0 : index
    %1 = vector.load %arg3[%c0_1, %c0_2] : memref<128x128xbf16, #tpu.memory_space<vmem>>, vector<128x128xbf16>
    %cst = arith.constant dense<0.000000e+00> : vector<16x128xf32>
    %2 = tpu.matmul %0, %1, %cst {dimension_numbers = #tpu.dot_dimension_numbers<[1], [0], [0], [1], [0, 0, 1, 1], [], []>} : vector<16x128xbf16>, vector<128x128xbf16>, vector<16x128xf32> -> vector<16x128xf32>
    %c0_3 = arith.constant 0 : index
    %c0_4 = arith.constant 0 : index
    %3 = vector.load %arg4[%c0_3, %c0_4] : memref<16x8xf32, #tpu.memory_space<vmem>>, vector<16x8xf32>
    %4 = vector.extract_strided_slice %3 {offsets = [0, 0], sizes = [16, 1], strides = [1, 1]} : vector<16x8xf32> to vector<16x1xf32>
    %5 = vector.extract_strided_slice %3 {offsets = [0, 1], sizes = [16, 1], strides = [1, 1]} : vector<16x8xf32> to vector<16x1xf32>
    %6 = vector.extract_strided_slice %3 {offsets = [0, 2], sizes = [16, 1], strides = [1, 1]} : vector<16x8xf32> to vector<16x1xf32>
    %c0_5 = arith.constant 0 : index
    %c0_6 = arith.constant 0 : index
    %7 = vector.load %arg5[%c0_5, %c0_6] : memref<1x128xf32, #tpu.memory_space<vmem>>, vector<1x128xf32>
    %8 = vector.broadcast %4 : vector<16x1xf32> to vector<16x128xf32>
    %9 = arith.mulf %2, %8 : vector<16x128xf32>
    %10 = vector.broadcast %7 : vector<1x128xf32> to vector<16x128xf32>
    %11 = arith.mulf %9, %10 : vector<16x128xf32>
    %cst_7 = arith.constant -1.000000e+00 : f32
    %cst_8 = arith.constant 1.000000e+00 : f32
    %12 = vector.broadcast %cst_7 : f32 to vector<16x128xf32>
    %13 = arith.maximumf %12, %11 : vector<16x128xf32>
    %14 = vector.broadcast %cst_8 : f32 to vector<16x128xf32>
    %15 = arith.minimumf %14, %13 : vector<16x128xf32>
    %16 = arith.mulf %15, %15 : vector<16x128xf32>
    %cst_9 = arith.constant 1.000000e+00 : f32
    %17 = vector.broadcast %cst_9 : f32 to vector<16x128xf32>
    %18 = arith.subf %17, %16 : vector<16x128xf32>
    %cst_10 = arith.constant 0.000000e+00 : f32
    %19 = vector.broadcast %cst_10 : f32 to vector<16x128xf32>
    %20 = arith.maximumf %18, %19 : vector<16x128xf32>
    %21 = math.sqrt %20 : vector<16x128xf32>
    %22 = vector.broadcast %5 : vector<16x1xf32> to vector<16x128xf32>
    %23 = arith.mulf %15, %22 : vector<16x128xf32>
    %24 = vector.broadcast %6 : vector<16x1xf32> to vector<16x128xf32>
    %25 = arith.mulf %21, %24 : vector<16x128xf32>
    %26 = arith.subf %23, %25 : vector<16x128xf32>
    %cst_11 = arith.constant 0.000000e+00 : f32
    %27 = vector.broadcast %cst_11 : f32 to vector<16x128xf32>
    %28 = arith.cmpf ogt, %15, %27 : vector<16x128xf32>
    %29 = arith.select %28, %26, %15 : vector<16x128xi1>, vector<16x128xf32>
    %30 = arith.truncf %15 : vector<16x128xf32> to vector<16x128xbf16>
    %c0_12 = arith.constant 0 : index
    %c0_13 = arith.constant 0 : index
    %31 = vector.load %arg6[%c0_12, %c0_13] : memref<16x128xbf16, #tpu.memory_space<vmem>>, vector<16x128xbf16>
    tpu.vector_store %arg6[%c0_12, %c0_13], %30 {strides = array<i32>} : memref<16x128xbf16, #tpu.memory_space<vmem>>, vector<16x128xbf16>,
    %32 = arith.truncf %29 : vector<16x128xf32> to vector<16x128xbf16>
    %c0_14 = arith.constant 0 : index
    %c0_15 = arith.constant 0 : index
    %33 = vector.load %arg7[%c0_14, %c0_15] : memref<16x128xbf16, #tpu.memory_space<vmem>>, vector<16x128xbf16>
    tpu.vector_store %arg7[%c0_14, %c0_15], %32 {strides = array<i32>} : memref<16x128xbf16, #tpu.memory_space<vmem>>, vector<16x128xbf16>,
    return
  }
  func.func @transform_0(%arg0: i32, %arg1: i32) -> (i32, i32) {
    %c0_i32 = arith.constant 0 : i32
    %c0_i32_0 = arith.constant 0 : i32
    return %arg0, %c0_i32 : i32, i32
  }
  func.func @transform_1(%arg0: i32, %arg1: i32) -> (i32, i32) {
    %c0_i32 = arith.constant 0 : i32
    %c0_i32_0 = arith.constant 0 : i32
    return %c0_i32, %arg1 : i32, i32
  }
  func.func @transform_2(%arg0: i32, %arg1: i32) -> (i32, i32) {
    %c0_i32 = arith.constant 0 : i32
    %c0_i32_0 = arith.constant 0 : i32
    return %arg0, %c0_i32 : i32, i32
  }
  func.func @transform_3(%arg0: i32, %arg1: i32) -> (i32, i32) {
    %c0_i32 = arith.constant 0 : i32
    %c0_i32_0 = arith.constant 0 : i32
    return %c0_i32, %arg1 : i32, i32
  }
  func.func @transform_4(%arg0: i32, %arg1: i32) -> (i32, i32) {
    %c0_i32 = arith.constant 0 : i32
    return %arg0, %arg1 : i32, i32
  }
  func.func @transform_5(%arg0: i32, %arg1: i32) -> (i32, i32) {
    %c0_i32 = arith.constant 0 : i32
    return %arg0, %arg1 : i32, i32
  }
}

</mosaic_0001>

<bundles_post_ra>
// kernel: tpu_custom_call.1
= control target key start
LH: loop header
LB: loop body
LE: loop exit
PB: predicated region body
PF: predicated region fallthrough
CT: control target
= control target key end

     0   :  { %11 = vsyncpa [#allocation3], 0  ;;  %s530_s0 = inlined_call_operand.vmem [shape: bf16[16,128], index: 0, kind: input, shape index: {}]   ;;  %s531_s1 = inlined_call_operand.hbm [shape: bf16[128,128], index: 1, kind: input, shape index: {}]   ;;  %s532_s2 = inlined_call_operand.vmem [shape: f32[16,8], index: 2, kind: input, shape index: {}]   ;;  %s533_s3 = inlined_call_operand.vmem [shape: f32[1,128], index: 3, kind: input, shape index: {}]   ;;  %s534_s4 = inlined_call_operand.hbm [shape: bf16[16,128], index: 4, kind: output, shape index: {0}]   ;;  %s535_s5 = inlined_call_operand.hbm [shape: bf16[16,128], index: 5, kind: output, shape index: {1}]  }
   0x1   :  { %12 = vsyncpa [#allocation4], 0 }
   0x2   :  { %13 = vsyncpa [#allocation7], 0  ;;  %s433_s18 = smov [#allocation2]   ;;  %s361_s22 = scalar_lea.hbm %s531_s1, 1024 }
   0x3   :  { %s21_s19 = sshll.u32 %s433_s18, 4  ;;  %p362_p0 = scmp.ne.s32.totalorder %s531_s1, %s361_s22  ;;  %s22_s19 = int_to_ptr.vmem [resolvable:$true] %s21_s19 }
   0x4   :  { %p365_p1 = scmp.lt.u32.totalorder %s361_s22, %s531_s1 }
   0x6   :  { %p367_p2 = pnand %p365_p1, %p362_p0 }
   0x8   :  { %370 = shalt.err (!%p367_p2)
}
   0x9   :  { %s371_s27 = scalar_lea.vmem %s22_s19, 1024  ;;  %p376_p4 = scmp.lt.s32.totalorder %s22_s19, %s22_s19 }
   0xa   :  { %p372_p3 = scmp.ne.s32.totalorder %s22_s19, %s371_s27  ;;  %p377_p5 = scmp.lt.s32.totalorder %s371_s27, %s371_s27 }
   0xc   :  { %p378_p6 = por %p377_p5, %p376_p4 }
   0xe   :  { %p379_p7 = pnand %p378_p6, %p372_p3 }
  0x10   :  { %382 = shalt.err (!%p379_p7)
}
  0x11   :  { %s434_s28 = smov 64   ;;  %s435_s29 = smov 4  }
  0x12   :  { %27 = dma.hbm_to_vmem [thread:$0]  %s531_s1, 1024, %s22_s19, [#allocation3], %s434_s28, %s434_s28, %s435_s29  }
  0x13   :  { %427 = dma.done.wait [#allocation3], 1024  }
  0x14   :  { %428 = vsyncadd [#allocation3], 4294966272  ;;  %v436_v0 = vmov 0.0   ;;  %vm437_vm0 = vmmov 0   ;;  %v438_v1 = vmov 0   ;;  %v439_v2 = vmov 1  }
  0x15   :  { %314 = vmatprep.subr.bf16.mxu0 %v436_v0  ;;  %330 = vmatprep.mubr.msk.bf16.mxu0 %vm437_vm0, %v436_v0  ;;  %v348_v3 = vld [vmem:[#allocation2] sm:$0xff]   ;;  %v349_v4 = vld [vmem:[#allocation2 + $0x8] sm:$0xff]   ;;  %v350_v5 = vld [vmem:[#allocation2 + $0x10] sm:$0xff]   ;;  %v440_v11 = vmov 2   ;;  %s441_s13 = smov [#allocation5]  }
  0x16   :  { %344 = vset.pattern.permute.xlu0 %v438_v1  ;;  %345 = vset.pattern.permute.xlu1 %v439_v2  ;;  %v149_v6 = vld [vmem:[%s532_s2] sm:$0xff]  ;;  %v351_v7 = vld [vmem:[#allocation2 + $0x18] sm:$0xff]   ;;  %v150_v8 = vld [vmem:[%s532_s2 + $0x8] sm:$0xff]  ;;  %s247_s14 = sshll.u32 %s441_s13, 4  ;;  %s248_s14 = int_to_ptr.vmem [resolvable:$true] %s247_s14 }
  0x17   :  { %315 = vmatpush3.bf16.msra.mxu0 %v348_v3  ;;  %154 = vperm.xlu0 %344, %v149_v6   ;;  %v352_v9 = vld [vmem:[#allocation2 + $0x20] sm:$0xff]   ;;  %v353_v10 = vld [vmem:[#allocation2 + $0x28] sm:$0xff]   ;;  %v354_v12 = vld [vmem:[#allocation2 + $0x30] sm:$0xff]   ;;  %p388_p9 = scmp.lt.s32.totalorder %s248_s14, %s248_s14 }
  0x18   :  { %316 = vmatprep.subr.bf16.mxu0 %v436_v0  ;;  %197 = vperm.xlu1 %345, %v149_v6   ;;  %v355_v13 = vld [vmem:[#allocation2 + $0x38] sm:$0xff]   ;;  %v356_v14 = vld [vmem:[%s530_s0] sm:$0xff]   ;;  %s383_s0 = scalar_lea.vmem %s248_s14, 128 }
  0x19   :  { %v284_v17 = vld [vmem:[%s533_s3] ss:$0 sm:$0xff]  ;;  %p384_p8 = scmp.ne.s32.totalorder %s248_s14, %s383_s0  ;;  %p389_p10 = scmp.lt.s32.totalorder %s383_s0, %s383_s0 }
  0x1b   :  { %317 = vmatpush3.bf16.msra.mxu0 %v349_v4  ;;  %159 = vperm.xlu0 %344, %v150_v8   ;;  %p390_p11 = por %p389_p10, %p388_p9 }
  0x1c   :  { %318 = vmatprep.subr.bf16.mxu0 %v436_v0  ;;  %201 = vperm.xlu1 %345, %v150_v8  }
  0x1d   :  { %p391_p12 = pnand %p390_p11, %p384_p8 }
  0x1f   :  { %319 = vmatpush3.bf16.msra.mxu0 %v350_v5  ;;  %346 = vset.pattern.permute.xlu0 %v440_v11 }
  0x20   :  { %320 = vmatprep.subr.bf16.mxu0 %v436_v0  ;;  %207 = vperm.xlu0 %346, %v149_v6  }
  0x21   :  { %347 = vset.pattern.permute.xlu1 %v440_v11 }
  0x22   :  { %211 = vperm.xlu1 %347, %v150_v8  }
  0x23   :  { %321 = vmatpush3.bf16.msra.mxu0 %v351_v7 }
  0x24   :  { %322 = vmatprep.subr.bf16.mxu0 %v436_v0 }
  0x27   :  { %323 = vmatpush3.bf16.msra.mxu0 %v352_v9 }
  0x28   :  { %324 = vmatprep.subr.bf16.mxu0 %v436_v0 }
  0x2b   :  { %325 = vmatpush3.bf16.msra.mxu0 %v353_v10 }
  0x2c   :  { %326 = vmatprep.subr.bf16.mxu0 %v436_v0 }
  0x2f   :  { %327 = vmatpush3.bf16.msra.mxu0 %v354_v12 }
  0x30   :  { %328 = vmatprep.subr.bf16.mxu0 %v436_v0 }
  0x33   :  { %329 = vmatpush3.bf16.msra.mxu0 %v355_v13 }
  0x36   :  { %331 = vmatmul.mubr.bf16.vlgmr.msra.gmra.mrb[0].mxu0 %v356_v14 }
  0x96   :  { %v155_v15 = vpop.permute.xlu0 %154 }
  0x9a   :  { %v160_v20 = vpop.permute.xlu0 %159 }
 0x109   :  { %v142_v16 = vpop.f32.mrb[0].mxu0 }
 0x10a   :  { %v162_v18 = vmul.f32 %v155_v15, %v142_v16  ;;  %v332_v19 = vpop.f32.mrb[1].mxu0 }
 0x10b   :  { %v145_v21 = vpop.f32.mrb[2].mxu0 }
 0x10c   :  { %v170_v22 = vmul.f32 %v284_v17, %v162_v18  ;;  %v163_v23 = vmul.f32 %v160_v20, %v145_v21  ;;  %v333_v24 = vpop.f32.mrb[3].mxu0 }
 0x10e   :  { %v285_v25 = vclamps-f32 %v170_v22, 1.0  ;;  %v171_v26 = vmul.f32 %v284_v17, %v163_v23 }
 0x110   :  { %v176_v27 = vmul.f32 %v285_v25, %v285_v25  ;;  %v286_v28 = vclamps-f32 %v171_v26, 1.0 }
 0x112   :  { %v178_v29 = vsub.f32 1.0, %v176_v27  ;;  %v177_v30 = vmul.f32 %v286_v28, %v286_v28  ;;  %v298_v31 = vpack.c.bf16 %v286_v28, %v285_v25 }
 0x114   :  { %v180_v32 = vmax.f32 %v178_v29, 0.0  ;;  %v179_v33 = vsub.f32 1.0, %v177_v30  ;;  %299 = vst [vmem:[#allocation5] sm:$0xff] %v298_v31  }
 0x115   :  { %394 = shalt.err (!%p391_p12)
}
 0x116   :  { %s395_s16 = scalar_lea.hbm %s534_s4, 128 }
 0x117   :  { %p396_p13 = scmp.ne.s32.totalorder %s534_s4, %s395_s16  ;;  %p399_p0 = scmp.lt.u32.totalorder %s395_s16, %s534_s4 }
 0x119   :  { %p401_p1 = pnand %p399_p0, %p396_p13 }
 0x11b   :  { %404 = shalt.err (!%p401_p1)
}
 0x11c   :  { %253 = dma.vmem_to_hbm [thread:$0]  %s248_s14, 128, %s534_s4, [#allocation4], %s434_s28, %s434_s28, %s435_s29   ;;  %v181_v34 = vmax.f32 %v179_v33, 0.0  ;;  %357 = vrsqrt.f32 %v180_v32  ;;  %v198_v35 = vpop.permute.xlu1 %197  ;;  %v208_v40 = vpop.permute.xlu0 %207  ;;  %vm184_vm1 = vcmp.eq.f32.partialorder %v180_v32, inf  ;;  %v187_v41 = vand.u32 2147483648, %v180_v32 }
 0x11d   :  { %vm186_vm2 = vcmp.eq.f32.partialorder %v180_v32, 0.0  ;;  %v204_v47 = vmul.f32 %v285_v25, %v198_v35  ;;  %s442_s4 = smov [#allocation6]   ;;  %vm218_vm5 = vcmp.gt.f32.partialorder %v285_v25, 0.0  ;;  %vm219_vm6 = vcmp.gt.f32.partialorder %v286_v28, 0.0 }
 0x11e   :  { %359 = vrsqrt.f32 %v181_v34  ;;  %vm191_vm3 = vcmp.eq.f32.partialorder %v181_v34, inf  ;;  %v194_v46 = vand.u32 2147483648, %v181_v34  ;;  %vm193_vm4 = vcmp.eq.f32.partialorder %v181_v34, 0.0  ;;  %s259_s23 = sshll.u32 %s442_s4, 4  ;;  %s260_s23 = int_to_ptr.vmem [resolvable:$true] %s259_s23 }
 0x11f   :  { %s405_s24 = scalar_lea.vmem %s260_s23, 128  ;;  %p410_p3 = scmp.lt.s32.totalorder %s260_s23, %s260_s23 }
 0x120   :  { %v202_v37 = vpop.permute.xlu1 %201  ;;  %p406_p2 = scmp.ne.s32.totalorder %s260_s23, %s405_s24  ;;  %p411_p4 = scmp.lt.s32.totalorder %s405_s24, %s405_s24 }
 0x121   :  { %v205_v51 = vmul.f32 %v286_v28, %v202_v37 }
 0x122   :  { %p412_p5 = por %p411_p4, %p410_p3 }
 0x124   :  { %v212_v45 = vpop.permute.xlu1 %211  ;;  %p413_p6 = pnand %p412_p5, %p406_p2 }
 0x126   :  { %v358_v36 = vpop.eup %357 }
 0x127   :  { %v183_v38 = vmul.f32 %v358_v36, %v180_v32 }
 0x128   :  { %v360_v39 = vpop.eup %359 }
 0x129   :  { %v185_v42 = vsel %vm184_vm1, %v180_v32, %v183_v38  ;;  %v190_v43 = vmul.f32 %v360_v39, %v181_v34 }
 0x12a   :  { %v188_v44 = vsel %vm186_vm2, %v187_v41, %v185_v42 }
 0x12b   :  { %v214_v48 = vmul.f32 %v208_v40, %v188_v44  ;;  %v192_v49 = vsel %vm191_vm3, %v181_v34, %v190_v43 }
 0x12c   :  { %v195_v50 = vsel %vm193_vm4, %v194_v46, %v192_v49 }
 0x12d   :  { %v216_v52 = vsub.f32 %v204_v47, %v214_v48  ;;  %v215_v53 = vmul.f32 %v212_v45, %v195_v50 }
 0x12f   :  { %v217_v54 = vsub.f32 %v205_v51, %v215_v53  ;;  %v220_v55 = vsel %vm218_vm5, %v216_v52, %v285_v25 }
 0x131   :  { %v221_v56 = vsel %vm219_vm6, %v217_v54, %v286_v28 }
 0x132   :  { %v303_v57 = vpack.c.bf16 %v221_v56, %v220_v55 }
 0x134   :  { %304 = vst [vmem:[#allocation6] sm:$0xff] %v303_v57  }
 0x135   :  { %416 = shalt.err (!%p413_p6)
}
 0x136   :  { %s417_s27 = scalar_lea.hbm %s535_s5, 128 }
 0x137   :  { %p418_p7 = scmp.ne.s32.totalorder %s535_s5, %s417_s27  ;;  %p421_p8 = scmp.lt.u32.totalorder %s417_s27, %s535_s5 }
 0x139   :  { %p423_p9 = pnand %p421_p8, %p418_p7 }
 0x13b   :  { %426 = shalt.err (!%p423_p9)
}
 0x13c   :  { %265 = dma.vmem_to_hbm [thread:$0]  %s260_s23, 128, %s535_s5, [#allocation7], %s434_s28, %s434_s28, %s435_s29  }
 0x13d   :  { %429 = dma.done.wait [#allocation4], 128  }
 0x13e   :  { %430 = vsyncadd [#allocation4], 4294967168 }
 0x13f   :  { %431 = dma.done.wait [#allocation7], 128  }
 0x140   :  { %432 = vsyncadd [#allocation7], 4294967168 }
 0x141   :  { %272 = vsyncpa [#allocation3], 1 }
 0x142   :  { %273 = vsyncpa [#allocation4], 1 }
 0x143   :  { %274 = vsyncpa [#allocation7], 1 }

</bundles_post_ra>
